<compile_context>
chip_gen: v7x
topology: tpu7x:2x2x1
jax: 0.10.0
libtpu: 0.0.40
codegen_flags: <defaults>
</compile_context>

<pallas_src>
import jax
import jax.numpy as jnp
from jax.experimental import pallas as pl
from jax.experimental.pallas import tpu as pltpu


def _actor_trunk_kernel(obs_ref,            # [tb, obs_dim]   bf16
                        w0_ref, b0_ref,     # [obs_dim, H] bf16, [1, H] f32
                        w1_ref, b1_ref,     # [H, H]       bf16, [1, H] f32
                        w2_ref, b2_ref,     # [H, A]       bf16, [1, A] f32
                        mu_ref):            # out: [tb, A] f32
    x = obs_ref[...]

    # hidden layer 0: Linear + ReLU (bf16 operands, f32 accumulation)
    h = jnp.dot(x, w0_ref[...], preferred_element_type=jnp.float32) + b0_ref[...]
    h = jnp.maximum(h, 0.0)

    # hidden layer 1: Linear + ReLU   (hidden_depth = 2)
    h = jnp.dot(h.astype(w1_ref.dtype), w1_ref[...],
                preferred_element_type=jnp.float32) + b1_ref[...]
    h = jnp.maximum(h, 0.0)

    # output layer: Linear
    logits = jnp.dot(h.astype(w2_ref.dtype), w2_ref[...],
                     preferred_element_type=jnp.float32) + b2_ref[...]

    # mu = sigmoid(logits): exp -> EUP, approx reciprocal -> EUP (VALU stays free)
    mu_ref[...] = pl.reciprocal(1.0 + jnp.exp(-logits), approx=True)


def ddpg_actor_forward(obs, params, std, *, tile_b=256):
    """Returns (mu, std) — the parameters of TruncatedNormal(mu, std, low, high)."""
    w0, b0, w1, b1, w2, b2 = params
    B, obs_dim = obs.shape
    H = w0.shape[1]
    A = w2.shape[1]

    # bf16 operands for the MXU; biases kept f32 (added to the f32 accumulator).
    cdtype = jnp.bfloat16
    obs_c = obs.astype(cdtype)
    w0c, w1c, w2c = (w.astype(cdtype) for w in (w0, w1, w2))
    b0f, b1f, b2f = (b.astype(jnp.float32) for b in (b0, b1, b2))

    # Batch tiling: tiny B -> one full-size block; large B -> pad to a multiple
    # of tile_b and pipeline obs loads / mu stores behind compute.
    if B <= tile_b:
        tb = B
        B_pad = B
    else:
        tb = tile_b
        B_pad = pl.cdiv(B, tb) * tb
        obs_c = jnp.pad(obs_c, ((0, B_pad - B), (0, 0)))

    grid = (B_pad // tb,)

    def batch_spec(shape):
        return pl.BlockSpec(shape, lambda i: (i, 0))

    def resident_spec(shape):
        return pl.BlockSpec(shape, lambda i: (0, 0))

    mu = pl.pallas_call(
        _actor_trunk_kernel,
        out_shape=jax.ShapeDtypeStruct((B_pad, A), jnp.float32),
        grid=grid,
        in_specs=[
            batch_spec((tb, obs_dim)),
            resident_spec((obs_dim, H)), resident_spec((1, H)),
            resident_spec((H, H)),       resident_spec((1, H)),
            resident_spec((H, A)),       resident_spec((1, A)),
        ],
        out_specs=batch_spec((tb, A)),
        compiler_params=pltpu.CompilerParams(
            dimension_semantics=("parallel",)),
    )(obs_c, w0c, b0f, w1c, b1f, w2c, b2f)

    if B_pad != B:
        mu = mu[:B]

    # std = ones_like(mu) * std  -> constant fill, built outside the kernel.
    std_out = jnp.full((B, A), std, dtype=jnp.float32)
    return mu, std_out


def init_params(key, obs_dim, hidden_dim, action_dim):
    """Deterministic synthetic init. Weights stored as [in, out] (already transposed
    relative to torch.nn.Linear's [out, in]); biases as [1, out]."""
    k0, k1, k2 = jax.random.split(key, 3)
    w0 = jax.random.normal(k0, (obs_dim, hidden_dim), jnp.float32) * 0.1
    b0 = jnp.zeros((1, hidden_dim), jnp.float32)
    w1 = jax.random.normal(k1, (hidden_dim, hidden_dim), jnp.float32) * 0.1
    b1 = jnp.zeros((1, hidden_dim), jnp.float32)
    w2 = jax.random.normal(k2, (hidden_dim, action_dim), jnp.float32) * 0.1
    b2 = jnp.zeros((1, action_dim), jnp.float32)
    return (w0, b0, w1, b1, w2, b2)


if __name__ == "__main__":
    # Small shapes consistent with the module: DDPGActor(obs_dim, action_dim,
    # hidden_dim, hidden_depth=2)
    batch = 2
    obs_dim = 16
    action_dim = 8
    hidden_dim = 32
    std_value = 0.2

    key = jax.random.PRNGKey(0)
    k_obs, k_params = jax.random.split(key)
    obs = jax.random.normal(k_obs, (batch, obs_dim), jnp.float32)
    params = init_params(k_params, obs_dim, hidden_dim, action_dim)

    mu, std = ddpg_actor_forward(obs, params, std_value)
    jax.block_until_ready((mu, std))

    # Reference check against plain JAX using the same bf16 operand precision
    # (exact sigmoid; kernel uses EUP approx reciprocal, hence the tolerance).
    w0, b0, w1, b1, w2, b2 = params
    ob = obs.astype(jnp.bfloat16)
    w0b, w1b, w2b = (w.astype(jnp.bfloat16) for w in (w0, w1, w2))
    h = jnp.maximum(jnp.dot(ob, w0b, preferred_element_type=jnp.float32) + b0, 0.0)
    h = jnp.maximum(jnp.dot(h.astype(jnp.bfloat16), w1b,
                            preferred_element_type=jnp.float32) + b1, 0.0)
    mu_ref = jax.nn.sigmoid(jnp.dot(h.astype(jnp.bfloat16), w2b,
                                    preferred_element_type=jnp.float32) + b2)
    assert jnp.allclose(mu, mu_ref, atol=5e-3), "mu mismatch"
    assert jnp.allclose(std, jnp.full_like(mu_ref, std_value), atol=1e-6), "std mismatch"

    print("KERNEL_OK")
</pallas_src>

<mosaic_0001>
module attributes {stable_mosaic.version = 11 : i64} {
  func.func @_actor_trunk_kernel(%arg0: i32, %arg1: memref<2x16xbf16, #tpu.memory_space<vmem>>, %arg2: memref<16x32xbf16, #tpu.memory_space<vmem>>, %arg3: memref<1x32xf32, #tpu.memory_space<vmem>>, %arg4: memref<32x32xbf16, #tpu.memory_space<vmem>>, %arg5: memref<1x32xf32, #tpu.memory_space<vmem>>, %arg6: memref<32x8xbf16, #tpu.memory_space<vmem>>, %arg7: memref<1x8xf32, #tpu.memory_space<vmem>>, %arg8: memref<2x8xf32, #tpu.memory_space<vmem>>) attributes {dimension_semantics = [#tpu.dimension_semantics<parallel>], iteration_bounds = array<i64: 1>, scalar_prefetch = 0 : i64, scratch_operands = 0 : i64, tpu.core_type = #tpu.core_type<tc>, window_params = [{transform_indices = @transform_0, window_bounds = array<i64: 2, 16>}, {pipeline_mode = #tpu.pipeline_mode<synchronous>, transform_indices = @transform_1, window_bounds = array<i64: 16, 32>}, {pipeline_mode = #tpu.pipeline_mode<synchronous>, transform_indices = @transform_2, window_bounds = array<i64: 1, 32>}, {pipeline_mode = #tpu.pipeline_mode<synchronous>, transform_indices = @transform_3, window_bounds = array<i64: 32, 32>}, {pipeline_mode = #tpu.pipeline_mode<synchronous>, transform_indices = @transform_4, window_bounds = array<i64: 1, 32>}, {pipeline_mode = #tpu.pipeline_mode<synchronous>, transform_indices = @transform_5, window_bounds = array<i64: 32, 8>}, {pipeline_mode = #tpu.pipeline_mode<synchronous>, transform_indices = @transform_6, window_bounds = array<i64: 1, 8>}, {transform_indices = @transform_7, window_bounds = array<i64: 2, 8>}]} {
    %c0 = arith.constant 0 : index
    %c0_0 = arith.constant 0 : index
    %0 = vector.load %arg1[%c0, %c0_0] : memref<2x16xbf16, #tpu.memory_space<vmem>>, vector<2x16xbf16>
    %c0_1 = arith.constant 0 : index
    %c0_2 = arith.constant 0 : index
    %1 = vector.load %arg2[%c0_1, %c0_2] : memref<16x32xbf16, #tpu.memory_space<vmem>>, vector<16x32xbf16>
    %cst = arith.constant dense<0.000000e+00> : vector<2x32xf32>
    %2 = tpu.matmul %0, %1, %cst {dimension_numbers = #tpu.dot_dimension_numbers<[1], [0], [0], [1], [0, 0, 1, 1], [], []>} : vector<2x16xbf16>, vector<16x32xbf16>, vector<2x32xf32> -> vector<2x32xf32>
    %c0_3 = arith.constant 0 : index
    %c0_4 = arith.constant 0 : index
    %3 = vector.load %arg3[%c0_3, %c0_4] : memref<1x32xf32, #tpu.memory_space<vmem>>, vector<1x32xf32>
    %4 = vector.broadcast %3 : vector<1x32xf32> to vector<2x32xf32>
    %5 = arith.addf %2, %4 : vector<2x32xf32>
    %cst_5 = arith.constant 0.000000e+00 : f32
    %6 = vector.broadcast %cst_5 : f32 to vector<2x32xf32>
    %7 = arith.maximumf %5, %6 : vector<2x32xf32>
    %8 = arith.truncf %7 : vector<2x32xf32> to vector<2x32xbf16>
    %c0_6 = arith.constant 0 : index
    %c0_7 = arith.constant 0 : index
    %9 = vector.load %arg4[%c0_6, %c0_7] : memref<32x32xbf16, #tpu.memory_space<vmem>>, vector<32x32xbf16>
    %cst_8 = arith.constant dense<0.000000e+00> : vector<2x32xf32>
    %10 = tpu.matmul %8, %9, %cst_8 {dimension_numbers = #tpu.dot_dimension_numbers<[1], [0], [0], [1], [0, 0, 1, 1], [], []>} : vector<2x32xbf16>, vector<32x32xbf16>, vector<2x32xf32> -> vector<2x32xf32>
    %c0_9 = arith.constant 0 : index
    %c0_10 = arith.constant 0 : index
    %11 = vector.load %arg5[%c0_9, %c0_10] : memref<1x32xf32, #tpu.memory_space<vmem>>, vector<1x32xf32>
    %12 = vector.broadcast %11 : vector<1x32xf32> to vector<2x32xf32>
    %13 = arith.addf %10, %12 : vector<2x32xf32>
    %cst_11 = arith.constant 0.000000e+00 : f32
    %14 = vector.broadcast %cst_11 : f32 to vector<2x32xf32>
    %15 = arith.maximumf %13, %14 : vector<2x32xf32>
    %16 = arith.truncf %15 : vector<2x32xf32> to vector<2x32xbf16>
    %c0_12 = arith.constant 0 : index
    %c0_13 = arith.constant 0 : index
    %17 = vector.load %arg6[%c0_12, %c0_13] : memref<32x8xbf16, #tpu.memory_space<vmem>>, vector<32x8xbf16>
    %cst_14 = arith.constant dense<0.000000e+00> : vector<2x8xf32>
    %18 = tpu.matmul %16, %17, %cst_14 {dimension_numbers = #tpu.dot_dimension_numbers<[1], [0], [0], [1], [0, 0, 1, 1], [], []>} : vector<2x32xbf16>, vector<32x8xbf16>, vector<2x8xf32> -> vector<2x8xf32>
    %c0_15 = arith.constant 0 : index
    %c0_16 = arith.constant 0 : index
    %19 = vector.load %arg7[%c0_15, %c0_16] : memref<1x8xf32, #tpu.memory_space<vmem>>, vector<1x8xf32>
    %20 = vector.broadcast %19 : vector<1x8xf32> to vector<2x8xf32>
    %21 = arith.addf %18, %20 : vector<2x8xf32>
    %cst_17 = arith.constant 0.000000e+00 : f32
    %22 = vector.broadcast %cst_17 : f32 to vector<2x8xf32>
    %23 = arith.subf %22, %21 : vector<2x8xf32>
    %24 = math.exp %23 : vector<2x8xf32>
    %cst_18 = arith.constant 1.000000e+00 : f32
    %25 = vector.broadcast %cst_18 : f32 to vector<2x8xf32>
    %26 = arith.addf %25, %24 : vector<2x8xf32>
    %27 = tpu.reciprocal %26 {approx = true} : vector<2x8xf32> -> vector<2x8xf32>
    %c0_19 = arith.constant 0 : index
    %c0_20 = arith.constant 0 : index
    %28 = vector.load %arg8[%c0_19, %c0_20] : memref<2x8xf32, #tpu.memory_space<vmem>>, vector<2x8xf32>
    tpu.vector_store %arg8[%c0_19, %c0_20], %27 {strides = array<i32>} : memref<2x8xf32, #tpu.memory_space<vmem>>, vector<2x8xf32>,
    return
  }
  func.func @transform_0(%arg0: i32) -> (i32, i32) {
    %c0_i32 = arith.constant 0 : i32
    %c0_i32_0 = arith.constant 0 : i32
    return %arg0, %c0_i32 : i32, i32
  }
  func.func @transform_1(%arg0: i32) -> (i32, i32) {
    %c0_i32 = arith.constant 0 : i32
    %c0_i32_0 = arith.constant 0 : i32
    %c0_i32_1 = arith.constant 0 : i32
    return %c0_i32, %c0_i32_0 : i32, i32
  }
  func.func @transform_2(%arg0: i32) -> (i32, i32) {
    %c0_i32 = arith.constant 0 : i32
    %c0_i32_0 = arith.constant 0 : i32
    %c0_i32_1 = arith.constant 0 : i32
    return %c0_i32, %c0_i32_0 : i32, i32
  }
  func.func @transform_3(%arg0: i32) -> (i32, i32) {
    %c0_i32 = arith.constant 0 : i32
    %c0_i32_0 = arith.constant 0 : i32
    %c0_i32_1 = arith.constant 0 : i32
    return %c0_i32, %c0_i32_0 : i32, i32
  }
  func.func @transform_4(%arg0: i32) -> (i32, i32) {
    %c0_i32 = arith.constant 0 : i32
    %c0_i32_0 = arith.constant 0 : i32
    %c0_i32_1 = arith.constant 0 : i32
    return %c0_i32, %c0_i32_0 : i32, i32
  }
  func.func @transform_5(%arg0: i32) -> (i32, i32) {
    %c0_i32 = arith.constant 0 : i32
    %c0_i32_0 = arith.constant 0 : i32
    %c0_i32_1 = arith.constant 0 : i32
    return %c0_i32, %c0_i32_0 : i32, i32
  }
  func.func @transform_6(%arg0: i32) -> (i32, i32) {
    %c0_i32 = arith.constant 0 : i32
    %c0_i32_0 = arith.constant 0 : i32
    %c0_i32_1 = arith.constant 0 : i32
    return %c0_i32, %c0_i32_0 : i32, i32
  }
  func.func @transform_7(%arg0: i32) -> (i32, i32) {
    %c0_i32 = arith.constant 0 : i32
    %c0_i32_0 = arith.constant 0 : i32
    return %arg0, %c0_i32 : i32, i32
  }
}

</mosaic_0001>

<bundles_post_ra>
// kernel: tpu_custom_call.1
= control target key start
LH: loop header
LB: loop body
LE: loop exit
PB: predicated region body
PF: predicated region fallthrough
CT: control target
= control target key end

     0   :  { %v323_v1 = vmov 0.0   ;;  %vm44_vm0 = vcmask 130048   ;;  %vm324_vm1 = vmmov 0   ;;  %s405_s0 = inlined_call_operand.vmem [shape: bf16[2,16], index: 0, kind: input, shape index: {}]   ;;  %s406_s1 = inlined_call_operand.vmem [shape: bf16[16,32], index: 1, kind: input, shape index: {}]   ;;  %s407_s2 = inlined_call_operand.vmem [shape: f32[1,32], index: 2, kind: input, shape index: {}]   ;;  %s408_s3 = inlined_call_operand.vmem [shape: bf16[32,32], index: 3, kind: input, shape index: {}]   ;;  %s409_s4 = inlined_call_operand.vmem [shape: f32[1,32], index: 4, kind: input, shape index: {}]   ;;  %s410_s5 = inlined_call_operand.vmem [shape: bf16[32,8], index: 5, kind: input, shape index: {}]   ;;  %s411_s6 = inlined_call_operand.vmem [shape: f32[1,8], index: 6, kind: input, shape index: {}]   ;;  %s412_s7 = inlined_call_operand.hbm [shape: f32[2,8], index: 7, kind: output, shape index: {}]  }
   0x1   :  { %v290_v0 = vld [vmem:[%s406_s1] sm:$0xff]   ;;  %265 = vmatprep.subr.bf16.mxu0 %v323_v1  ;;  %271 = vmatprep.subr.bf16.mxu1 %v323_v1 }
   0x2   :  { %v28_v2 = vld [vmem:[%s405_s0] sm:$0x1]  ;;  %266 = vmatpush3.bf16.msra.mxu0 %v290_v0  ;;  %267 = vmatprep.mubr.msk.bf16.mxu0 %vm324_vm1, %v323_v1 }
   0x3   :  { %275 = vmatprep.mubr.msk.bf16.mxu1 %vm324_vm1, %v323_v1  ;;  %279 = vmatprep.subr.bf16.mxu0 %v323_v1 }
   0x4   :  { %12 = vsyncpa [#allocation3], 0  ;;  %v291_v3 = vld [vmem:[%s408_s3] sm:$0xff]   ;;  %v292_v4 = vld [vmem:[%s408_s3 + $0x8] sm:$0xff]   ;;  %vm113_vm2 = vcmask 261120   ;;  %vm230_vm3 = vcmask 58368  }
   0x5   :  { %268 = vmatmul.mubr.msk.bf16.vlgmr.msra.gmra.mrb[0].mxu0 %vm44_vm0, %v28_v2  ;;  %272 = vmatpush3.bf16.msra.mxu1 %v291_v3  ;;  %v293_v5 = vld [vmem:[%s410_s5] sm:$0xff]   ;;  %v294_v14 = vld [vmem:[%s410_s5 + $0x8] sm:$0xff]  }
   0x6   :  { %283 = vmatprep.mubr.msk.bf16.mxu0 %vm324_vm1, %v323_v1  ;;  %273 = vmatprep.subr.bf16.mxu1 %v323_v1  ;;  %v246_v6 = vld [vmem:[%s407_s2] ss:$0 sm:$0xff] }
   0x7   :  { %280 = vmatpush3.bf16.msra.mxu0 %v293_v5  ;;  %v249_v15 = vld [vmem:[%s409_s4] ss:$0 sm:$0xff]  ;;  %s325_s4 = smov [#allocation2]  }
   0x8   :  { %281 = vmatprep.subr.bf16.mxu0 %v323_v1  ;;  %v253_v23 = vld [vmem:[%s411_s6] ss:$0 sm:$0xff]  ;;  %s238_s5 = sshll.u32 %s325_s4, 4  ;;  %s239_s5 = int_to_ptr.vmem [resolvable:$true] %s238_s5 }
   0x9   :  { %274 = vmatpush3.bf16.msra.mxu1 %v292_v4  ;;  %s299_s15 = scalar_lea.vmem %s239_s5, 32  ;;  %p304_p1 = scmp.lt.s32.totalorder %s239_s5, %s239_s5 }
   0xa   :  { %p300_p0 = scmp.ne.s32.totalorder %s239_s5, %s299_s15  ;;  %p305_p2 = scmp.lt.s32.totalorder %s299_s15, %s299_s15 }
   0xb   :  { %282 = vmatpush3.bf16.msra.mxu0 %v294_v14 }
   0xc   :  { %p306_p3 = por %p305_p2, %p304_p1 }
   0xe   :  { %p307_p4 = pnand %p306_p3, %p300_p0 }
  0xd8   :  { %v82_v7 = vpop.f32.mrb[0].mxu0 }
  0xd9   :  { %v83_v8 = vadd.f32 %v246_v6, %v82_v7  ;;  %v269_v9 = vpop.f32.mrb[1].mxu0 }
  0xda   :  { %v85_v10 = vpop.f32.mrb[2].mxu0 }
  0xdb   :  { %v88_v11 = vmax.f32 %v83_v8, 0.0  ;;  %v270_v12 = vpop.f32.mrb[3].mxu0 }
  0xdd   :  { %v89_v13 = vpack.c.bf16 %v88_v11, %v88_v11 }
  0xdf   :  { %276 = vmatmul.mubr.msk.bf16.vlgmr.msra.gmra.mrb[0].mxu1 %vm113_vm2, %v89_v13 }
 0x1b2   :  { %v151_v16 = vpop.f32.mrb[0].mxu1 }
 0x1b3   :  { %v152_v17 = vadd.f32 %v249_v15, %v151_v16  ;;  %v277_v18 = vpop.f32.mrb[1].mxu1 }
 0x1b4   :  { %v154_v19 = vpop.f32.mrb[2].mxu1 }
 0x1b5   :  { %v157_v20 = vmax.f32 %v152_v17, 0.0  ;;  %v278_v21 = vpop.f32.mrb[3].mxu1 }
 0x1b7   :  { %v158_v22 = vpack.c.bf16 %v157_v20, %v157_v20 }
 0x1b9   :  { %284 = vmatmul.mubr.msk.bf16.vlgmr.msra.gmra.mrb[4].mxu0 %vm113_vm2, %v158_v22 }
 0x28c   :  { %v219_v24 = vpop.f32.mrb[4].mxu0 }
 0x28d   :  { %v220_v25 = vadd.f32 %v253_v23, %v219_v24  ;;  %v285_v26 = vpop.f32.mrb[5].mxu0 }
 0x28e   :  { %v222_v27 = vpop.f32.mrb[6].mxu0 }
 0x28f   :  { %v225_v28 = vsub.f32 0.0, %v220_v25  ;;  %v286_v29 = vpop.f32.mrb[7].mxu0 }
 0x291   :  { %v226_v30 = vmul.f32 1.442695, %v225_v28 }
 0x293   :  { %295 = vpow2.f32 %v226_v30 }
 0x29d   :  { %v296_v31 = vpop.eup %295 }
 0x29e   :  { %v228_v32 = vadd.f32 1.0, %v296_v31 }
 0x2a0   :  { %297 = vrcp.f32 %v228_v32 }
 0x2aa   :  { %v298_v33 = vpop.eup %297 }
 0x2ab   :  { %231 = vst.msk [vmem:[#allocation2] sm:$0x3] %vm230_vm3, %v298_v33 }
 0x2ac   :  { %310 = shalt.err (!%p307_p4)
}
 0x2ad   :  { %s311_s17 = scalar_lea.hbm %s412_s7, 32 }
 0x2ae   :  { %p312_p5 = scmp.ne.s32.totalorder %s412_s7, %s311_s17  ;;  %p315_p6 = scmp.lt.u32.totalorder %s311_s17, %s412_s7 }
 0x2b0   :  { %p317_p7 = pnand %p315_p6, %p312_p5 }
 0x2b2   :  { %320 = shalt.err (!%p317_p7)
}
 0x2b3   :  { %241 = dma.vmem_to_hbm [thread:$0]  %s239_s5, 32, %s412_s7, [#allocation3]  }
 0x2b4   :  { %321 = dma.done.wait [#allocation3], 32  }
 0x2b5   :  { %322 = vsyncadd [#allocation3], 4294967264 }
 0x2b6   :  { %245 = vsyncpa [#allocation3], 1 }

</bundles_post_ra>
